<compile_context>
chip_gen: v7x
topology: tpu7x:2x2x1
jax: 0.10.0
libtpu: 0.0.40
codegen_flags: <defaults>
</compile_context>

<pallas_src>
import jax
import jax.numpy as jnp
from jax.experimental import pallas as pl
from jax.experimental.pallas import tpu as pltpu


def _cdiv(a: int, b: int) -> int:
    return -(-a // b)


def _round_up(x: int, m: int) -> int:
    return ((x + m - 1) // m) * m


def _pick_tile(rows8: int, max_tile_rows: int, min_grid_steps: int = 2):
    """Choose (tile_rows, padded_rows) for an 8-aligned row count.

    Prefers an exact divisor of rows8 (no wasted compute, no extra slice rows)
    and at least `min_grid_steps` grid steps when rows8 allows, so the
    "parallel" grid axis actually uses both TensorCores on v7x.
    """
    m = rows8 // 8
    mu = max(1, max_tile_rows // 8)
    nt = max(min(min_grid_steps, m), _cdiv(m, mu))
    for cand in range(nt, min(m, nt + 16) + 1):
        if m % cand == 0:
            return (m // cand) * 8, rows8
    tile_u = _cdiv(m, nt)                    # fallback: small (<1 tile) padding
    return tile_u * 8, tile_u * nt * 8


# ---------------------------------------------------------------------------
# Kernel 1 (generic): batch on sublanes, embedding_dim on lanes.
# Used when D >= 128 or D does not divide 128.
# scale/phase are full-width (1, D): out[:, j] = sin(t * scale[j] + phase[j]),
# phase[j] = pi/2 for j >= D//2 gives the cos half -- one sin per tile.
# ---------------------------------------------------------------------------
def _sinusoidal_kernel(t_ref, scale_ref, phase_ref, o_ref):
    # t_ref: (TILE_B, 1) f32   scale/phase: (1, D)   o_ref: (TILE_B, D)
    out = jnp.sin(t_ref[...] * scale_ref[...] + phase_ref[...])
    o_ref[...] = out.astype(o_ref.dtype)              # ONE full-width store


# ---------------------------------------------------------------------------
# Kernel 2 (lane-folded): for narrow D (D < 128, 128 % D == 0).
# group = 128 // D batch rows per 128-lane output row -> every store is a full
# unmasked 128-lane store.  Timesteps are expanded across lanes with a tiny
# resident one-hot matmul on the otherwise-idle MXU (precision pinned so f32
# timesteps are never demoted to a single bf16 pass).
# ---------------------------------------------------------------------------
def _sinusoidal_folded_kernel(t_ref, expand_ref, scale_ref, phase_ref, o_ref):
    # t_ref: (TILE_R, group)  expand: (group, 128)  scale/phase: (1, 128)
    # o_ref: (TILE_R, 128)
    t_full = jnp.dot(t_ref[...], expand_ref[...],
                     preferred_element_type=jnp.float32,
                     precision=jax.lax.Precision.HIGHEST)   # (TILE_R, 128)
    out = jnp.sin(t_full * scale_ref[...] + phase_ref[...])
    o_ref[...] = out.astype(o_ref.dtype)              # ONE 128-lane store


# ---------------------------------------------------------------------------
# Hoisted constants (computed once in the wrapper, resident across the grid)
# ---------------------------------------------------------------------------
def _generic_consts(D: int):
    half = D // 2
    coeff = jnp.log(jnp.float32(10000.0)) / jnp.float32(half - 1)
    j = jnp.arange(D, dtype=jnp.int32)
    freq = (j % half).astype(jnp.float32)
    scale = jnp.exp(-freq * coeff).reshape(1, D)
    phase = jnp.where(j >= half, jnp.float32(jnp.pi / 2),
                      jnp.float32(0.0)).reshape(1, D)
    return scale, phase


def _folded_consts(D: int):
    half = D // 2
    group = 128 // D
    coeff = jnp.log(jnp.float32(10000.0)) / jnp.float32(half - 1)
    lane = jnp.arange(128, dtype=jnp.int32)
    k = lane % D                                           # column within one embedding
    freq = (k % half).astype(jnp.float32)
    scale = jnp.exp(-freq * coeff).reshape(1, 128)
    phase = jnp.where(k >= half, jnp.float32(jnp.pi / 2),
                      jnp.float32(0.0)).reshape(1, 128)
    expand = (lane[None, :] // D ==
              jnp.arange(group, dtype=jnp.int32)[:, None]).astype(jnp.float32)
    return scale, phase, expand                            # (1,128),(1,128),(group,128)


# ---------------------------------------------------------------------------
# Wrapper
# ---------------------------------------------------------------------------
def sinusoidal_time_embedding(timesteps: jax.Array, embedding_dim: int, *,
                              out_dtype=jnp.float32,
                              block_rows: int = 2048) -> jax.Array:
    """Pallas TPU implementation of SinusoidalTimeEmbedding.forward.

    timesteps: (B,) array (cast to f32).
    returns:   (B, embedding_dim) array, [sin | cos] along the last axis.
    """
    assert embedding_dim % 2 == 0 and embedding_dim >= 4, (
        "embedding_dim must be even and >= 4 (half_dim - 1 must be nonzero)")
    B = timesteps.shape[0]
    D = embedding_dim
    t = timesteps.astype(jnp.float32).reshape(B)

    folded = (D < 128) and (128 % D == 0)

    if folded:
        group = 128 // D
        rows8 = _round_up(_cdiv(B, group), 8)
        tile_r, rows = _pick_tile(rows8, block_rows)       # >=2 grid steps if possible
        bp = rows * group
        if bp != B:
            t = jnp.pad(t, (0, bp - B))
        t2d = t.reshape(rows, group)                       # free reshape

        scale, phase, expand = _folded_consts(D)
        out = pl.pallas_call(
            _sinusoidal_folded_kernel,
            out_shape=jax.ShapeDtypeStruct((rows, 128), out_dtype),
            grid=(rows // tile_r,),
            in_specs=[
                pl.BlockSpec((tile_r, group), lambda i: (i, 0)),
                pl.BlockSpec((group, 128), lambda i: (0, 0)),   # resident consts
                pl.BlockSpec((1, 128), lambda i: (0, 0)),
                pl.BlockSpec((1, 128), lambda i: (0, 0)),
            ],
            out_specs=pl.BlockSpec((tile_r, 128), lambda i: (i, 0)),
            compiler_params=pltpu.CompilerParams(
                dimension_semantics=("parallel",)),
        )(t2d, expand, scale, phase)
        out = out.reshape(bp, D)                           # free reshape back
        return out[:B] if bp != B else out

    # Generic path: cap the output block at ~4 MiB (x2 double buffering fits
    # default scoped VMEM on v5e/v6e/v7x).
    max_rows = max(8, ((4 * 1024 * 1024) // (D * 4)) // 8 * 8)
    rows8 = _round_up(B, 8)
    tile_b, bp = _pick_tile(rows8, max_rows)               # >=2 grid steps if possible
    if bp != B:
        t = jnp.pad(t, (0, bp - B))
    t2d = t.reshape(bp, 1)

    scale, phase = _generic_consts(D)
    out = pl.pallas_call(
        _sinusoidal_kernel,
        out_shape=jax.ShapeDtypeStruct((bp, D), out_dtype),
        grid=(bp // tile_b,),
        in_specs=[
            pl.BlockSpec((tile_b, 1), lambda i: (i, 0)),
            pl.BlockSpec((1, D), lambda i: (0, 0)),        # resident consts
            pl.BlockSpec((1, D), lambda i: (0, 0)),
        ],
        out_specs=pl.BlockSpec((tile_b, D), lambda i: (i, 0)),
        compiler_params=pltpu.CompilerParams(
            dimension_semantics=("parallel",)),
    )(t2d, scale, phase)
    return out[:B] if bp != B else out


# ---------------------------------------------------------------------------
# Pure-JAX reference (mirrors the PyTorch module)
# ---------------------------------------------------------------------------
def _reference(timesteps: jax.Array, embedding_dim: int) -> jax.Array:
    half = embedding_dim // 2
    scale = jnp.exp(-jnp.arange(half, dtype=jnp.float32)
                    * (jnp.log(jnp.float32(10000.0)) / (half - 1)))
    emb = timesteps.astype(jnp.float32)[:, None] * scale[None, :]
    return jnp.concatenate([jnp.sin(emb), jnp.cos(emb)], axis=-1)


if __name__ == "__main__":
    key = jax.random.PRNGKey(0)
    k1, k2, k3 = jax.random.split(key, 3)

    # f32 sin/cos of arguments up to ~1e3: ulp-level argument differences
    # (|t| * eps ~ 1e-4), the f32 rounding of pi/2 in the sin(x + pi/2) == cos(x)
    # rewrite (<= ~1e-7), and transcendental-implementation differences between
    # the kernel and XLA get amplified by range reduction, so we check at 5e-3.
    # Structural bugs (wrong lane mapping, swapped sin/cos, wrong frequency)
    # produce O(1) errors and are still caught.
    ATOL = 5e-3

    # Case 1: narrow embedding -> lane-folded kernel path (diffusion-style t).
    B1, D1 = 8, 32
    t1 = jax.random.randint(k1, (B1,), 0, 1000).astype(jnp.float32)
    out1 = sinusoidal_time_embedding(t1, D1)
    jax.block_until_ready(out1)
    ref1 = _reference(t1, D1)
    assert out1.shape == (B1, D1) and out1.dtype == jnp.float32
    assert jnp.allclose(out1, ref1, atol=ATOL, rtol=ATOL), "folded path mismatch"

    # Case 2: wide embedding -> generic kernel path (2 grid steps).
    B2, D2 = 16, 256
    t2 = jax.random.randint(k2, (B2,), 0, 1000).astype(jnp.float32)
    out2 = sinusoidal_time_embedding(t2, D2)
    jax.block_until_ready(out2)
    ref2 = _reference(t2, D2)
    assert out2.shape == (B2, D2) and out2.dtype == jnp.float32
    assert jnp.allclose(out2, ref2, atol=ATOL, rtol=ATOL), "generic path mismatch"

    # Case 3: folded path with a multi-tile grid and unaligned batch (padding
    # + trailing slice exercised).
    B3, D3 = 1000, 64
    t3 = jax.random.randint(k3, (B3,), 0, 1000).astype(jnp.float32)
    out3 = sinusoidal_time_embedding(t3, D3)
    jax.block_until_ready(out3)
    ref3 = _reference(t3, D3)
    assert out3.shape == (B3, D3) and out3.dtype == jnp.float32
    assert jnp.allclose(out3, ref3, atol=ATOL, rtol=ATOL), "multi-tile mismatch"

    print("KERNEL_OK")
</pallas_src>

<mosaic_0001>
module attributes {stable_mosaic.version = 11 : i64} {
  func.func @_sinusoidal_folded_kernel(%arg0: i32, %arg1: memref<8x4xf32, #tpu.memory_space<vmem>>, %arg2: memref<4x128xf32, #tpu.memory_space<vmem>>, %arg3: memref<1x128xf32, #tpu.memory_space<vmem>>, %arg4: memref<1x128xf32, #tpu.memory_space<vmem>>, %arg5: memref<8x128xf32, #tpu.memory_space<vmem>>) attributes {dimension_semantics = [#tpu.dimension_semantics<parallel>], iteration_bounds = array<i64: 1>, scalar_prefetch = 0 : i64, scratch_operands = 0 : i64, tpu.core_type = #tpu.core_type<tc>, window_params = [{transform_indices = @transform_0, window_bounds = array<i64: 8, 4>}, {pipeline_mode = #tpu.pipeline_mode<synchronous>, transform_indices = @transform_1, window_bounds = array<i64: 4, 128>}, {pipeline_mode = #tpu.pipeline_mode<synchronous>, transform_indices = @transform_2, window_bounds = array<i64: 1, 128>}, {pipeline_mode = #tpu.pipeline_mode<synchronous>, transform_indices = @transform_3, window_bounds = array<i64: 1, 128>}, {transform_indices = @transform_4, window_bounds = array<i64: 8, 128>}]} {
    %c0 = arith.constant 0 : index
    %c0_0 = arith.constant 0 : index
    %0 = vector.load %arg1[%c0, %c0_0] : memref<8x4xf32, #tpu.memory_space<vmem>>, vector<8x4xf32>
    %c0_1 = arith.constant 0 : index
    %c0_2 = arith.constant 0 : index
    %1 = vector.load %arg2[%c0_1, %c0_2] : memref<4x128xf32, #tpu.memory_space<vmem>>, vector<4x128xf32>
    %cst = arith.constant dense<0.000000e+00> : vector<8x128xf32>
    %2 = tpu.matmul %0, %1, %cst {dimension_numbers = #tpu.dot_dimension_numbers<[1], [0], [0], [1], [0, 0, 1, 1], [], []>, precision = #tpu.contract_precision<fp32>} : vector<8x4xf32>, vector<4x128xf32>, vector<8x128xf32> -> vector<8x128xf32>
    %c0_3 = arith.constant 0 : index
    %c0_4 = arith.constant 0 : index
    %3 = vector.load %arg3[%c0_3, %c0_4] : memref<1x128xf32, #tpu.memory_space<vmem>>, vector<1x128xf32>
    %4 = vector.broadcast %3 : vector<1x128xf32> to vector<8x128xf32>
    %5 = arith.mulf %2, %4 : vector<8x128xf32>
    %c0_5 = arith.constant 0 : index
    %c0_6 = arith.constant 0 : index
    %6 = vector.load %arg4[%c0_5, %c0_6] : memref<1x128xf32, #tpu.memory_space<vmem>>, vector<1x128xf32>
    %7 = vector.broadcast %6 : vector<1x128xf32> to vector<8x128xf32>
    %8 = arith.addf %5, %7 : vector<8x128xf32>
    %9 = math.sin %8 : vector<8x128xf32>
    %c0_7 = arith.constant 0 : index
    %c0_8 = arith.constant 0 : index
    %10 = vector.load %arg5[%c0_7, %c0_8] : memref<8x128xf32, #tpu.memory_space<vmem>>, vector<8x128xf32>
    tpu.vector_store %arg5[%c0_7, %c0_8], %9 {strides = array<i32>} : memref<8x128xf32, #tpu.memory_space<vmem>>, vector<8x128xf32>,
    return
  }
  func.func @transform_0(%arg0: i32) -> (i32, i32) {
    %c0_i32 = arith.constant 0 : i32
    %c0_i32_0 = arith.constant 0 : i32
    return %arg0, %c0_i32 : i32, i32
  }
  func.func @transform_1(%arg0: i32) -> (i32, i32) {
    %c0_i32 = arith.constant 0 : i32
    %c0_i32_0 = arith.constant 0 : i32
    %c0_i32_1 = arith.constant 0 : i32
    return %c0_i32, %c0_i32_0 : i32, i32
  }
  func.func @transform_2(%arg0: i32) -> (i32, i32) {
    %c0_i32 = arith.constant 0 : i32
    %c0_i32_0 = arith.constant 0 : i32
    %c0_i32_1 = arith.constant 0 : i32
    return %c0_i32, %c0_i32_0 : i32, i32
  }
  func.func @transform_3(%arg0: i32) -> (i32, i32) {
    %c0_i32 = arith.constant 0 : i32
    %c0_i32_0 = arith.constant 0 : i32
    %c0_i32_1 = arith.constant 0 : i32
    return %c0_i32, %c0_i32_0 : i32, i32
  }
  func.func @transform_4(%arg0: i32) -> (i32, i32) {
    %c0_i32 = arith.constant 0 : i32
    %c0_i32_0 = arith.constant 0 : i32
    return %arg0, %c0_i32 : i32, i32
  }
}

</mosaic_0001>

<bundles_post_ra>
// kernel: tpu_custom_call.1
= control target key start
LH: loop header
LB: loop body
LE: loop exit
PB: predicated region body
PF: predicated region fallthrough
CT: control target
= control target key end

     0   :  { %vm24_vm0 = vcmask 1043456   ;;  %v707_v2 = vmov 0.0   ;;  %vm708_vm1 = vmmov 0   ;;  %vm20_vm2 = vcmask 31744   ;;  %s792_s0 = inlined_call_operand.vmem [shape: f32[8,4], index: 0, kind: input, shape index: {}]   ;;  %s793_s1 = inlined_call_operand.vmem [shape: f32[4,128], index: 1, kind: input, shape index: {}]   ;;  %s794_s2 = inlined_call_operand.vmem [shape: f32[1,128], index: 2, kind: input, shape index: {}]   ;;  %s795_s3 = inlined_call_operand.vmem [shape: f32[1,128], index: 3, kind: input, shape index: {}]   ;;  %s796_s4 = inlined_call_operand.hbm [shape: f32[8,128], index: 4, kind: output, shape index: {}]  }
   0x1   :  { %v19_v0 = vld [vmem:[%s793_s1] sm:$0xf]  ;;  %642 = vmatprep.subr.mxu0 %v707_v2  ;;  %644 = vmatprep.mubr.msk.f32.mxu0 %vm708_vm1, %v707_v2 }
   0x2   :  { %v18_v1 = vld [vmem:[%s792_s0] sm:$0xff]  ;;  %v26_v3 = vsel %vm24_vm0, %v19_v0, 0 }
   0x3   :  { %9 = vsyncpa [#allocation3], 0  ;;  %v29_v4 = vand.u32 4294901760, %v26_v3  ;;  %v22_v5 = vsel %vm20_vm2, %v18_v1, 0  ;;  %627 = vmatprep.subr.mxu1 %v707_v2  ;;  %629 = vmatprep.mubr.msk.f32.mxu1 %vm708_vm1, %v707_v2  ;;  %v609_v18 = vld [vmem:[%s794_s2] ss:$0 sm:$0xff] }
   0x4   :  { %v94_v6 = vand.u32 4294901760, %v22_v5  ;;  %v610_v21 = vld [vmem:[%s795_s3] ss:$0 sm:$0xff]  ;;  %v709_v34 = vmov 683565275   ;;  %s715_s2 = smov [#allocation2]  }
   0x5   :  { %v106_v7 = vsub.f32 %v26_v3, %v29_v4  ;;  %643 = vmatpush3.msra.mxu0 %v29_v4  ;;  %628 = vmatpush3.msra.mxu1 %v29_v4  ;;  %v710_v36 = vmov 2475754826   ;;  %v711_v39 = vmov 2131351028   ;;  %v712_v42 = vmov 2102212464  }
   0x6   :  { %v95_v8 = vsub.f32 %v22_v5, %v94_v6  ;;  %632 = vmatprep.subr.mxu1 %v707_v2  ;;  %647 = vmatprep.subr.mxu0 %v707_v2  ;;  %v713_v45 = vmov 920167782   ;;  %v714_v48 = vmov 1326507024   ;;  %s601_s3 = sshll.u32 %s715_s2, 4  ;;  %s602_s3 = int_to_ptr.vmem [resolvable:$true] %s601_s3 }
   0x7   :  { %v107_v9 = vand.u32 4294901760, %v106_v7  ;;  %s683_s21 = scalar_lea.vmem %s602_s3, 128  ;;  %p688_p1 = scmp.lt.s32.totalorder %s602_s3, %s602_s3 }
   0x8   :  { %v96_v10 = vand.u32 4294901760, %v95_v8  ;;  %p684_p0 = scmp.ne.s32.totalorder %s602_s3, %s683_s21  ;;  %p689_p2 = scmp.lt.s32.totalorder %s683_s21, %s683_s21 }
   0x9   :  { %v108_v11 = vsub.f32 %v106_v7, %v107_v9 }
   0xa   :  { %645 = vmatmul.mubr.f32.vlgmr.msra.gmra.mrb[0].mxu0 %v96_v10  ;;  %v97_v12 = vsub.f32 %v95_v8, %v96_v10  ;;  %p690_p3 = por %p689_p2, %p688_p1 }
   0xb   :  { %v109_v13 = vand.u32 4294901760, %v108_v11  ;;  %648 = vmatpush3.msra.mxu0 %v107_v9  ;;  %649 = vmatprep.mubr.msk.f32.mxu0 %vm708_vm1, %v707_v2 }
   0xc   :  { %v98_v14 = vand.u32 4294901760, %v97_v12  ;;  %652 = vmatprep.subr.mxu0 %v707_v2  ;;  %p691_p4 = pnand %p690_p3, %p684_p0 }
   0xe   :  { %630 = vmatmul.mubr.f32.vlgmr.msra.gmra.mrb[0].mxu1 %v98_v14 }
   0xf   :  { %633 = vmatpush3.msra.mxu1 %v109_v13  ;;  %634 = vmatprep.mubr.msk.f32.mxu1 %vm708_vm1, %v707_v2 }
  0x10   :  { %637 = vmatprep.subr.mxu1 %v707_v2 }
  0x12   :  { %650 = vmatmul.mubr.f32.vlgmr.msra.gmra.mrb[0].mxu0 %v94_v6 }
  0x13   :  { %653 = vmatpush3.msra.mxu0 %v29_v4  ;;  %654 = vmatprep.mubr.msk.f32.mxu0 %vm708_vm1, %v707_v2 }
  0x16   :  { %635 = vmatmul.mubr.f32.vlgmr.msra.gmra.mrb[0].mxu1 %v94_v6 }
  0x17   :  { %638 = vmatpush3.msra.mxu1 %v106_v7  ;;  %639 = vmatprep.mubr.msk.f32.mxu1 %vm708_vm1, %v707_v2 }
  0x1a   :  { %655 = vmatmul.mubr.f32.vlgmr.msra.gmra.mrb[0].mxu0 %v94_v6 }
  0x1e   :  { %640 = vmatmul.mubr.f32.vlgmr.msra.gmra.mrb[0].mxu1 %v95_v8 }
  0xed   :  { %v470_v15 = vpop.f32.mrb[0].mxu0 }
  0xee   :  { %v656_v16 = vpop.f32.mrb[1].mxu0 }
  0xf1   :  { %v250_v17 = vpop.f32.mrb[0].mxu1 }
  0xf2   :  { %v657_v19 = vadd.f32 %v470_v15, %v250_v17  ;;  %v641_v20 = vpop.f32.mrb[1].mxu1 }
  0xf4   :  { %v481_v22 = vmul.f32 %v657_v19, %v609_v18 }
  0xf6   :  { %v759_v23 = vadd.f32 %v610_v21, %v481_v22 }
  0xf8   :  { %v493_v24 = vand.u32 2139095040, %v759_v23  ;;  %v490_v28 = vand.u32 2147483647, %v759_v23  ;;  %vm492_vm10 = vcmp.lt.s32.totalorder %v759_v23, 0  ;;  %vm582_vm15 = vweird.f32 %v759_v23 }
  0xfa   :  { %v494_v25 = vshrl.u32 %v493_v24, 23  ;;  %v497_v32 = vand.u32 8388607, %v490_v28  ;;  %vm491_vm11 = vcmp.le.f32.partialorder %v490_v28, 0.7853982 }
  0xfc   :  { %v611_v26 = vadd.s32 4294967169, %v494_v25  ;;  %v498_v50 = vor.u32 8388608, %v497_v32 }
  0xfe   :  { %v500_v27 = vadd.s32 1, %v611_v26  ;;  %v538_v0 = vshll.u32 %v498_v50, 8 }
 0x100   :  { %vm501_vm3 = vcmp.gt.s32.totalorder %v500_v27, 0 }
 0x101   :  { %v502_v29 = vsel %vm501_vm3, %v500_v27, 0 }
 0x102   :  { %v504_v30 = vand.u32 31, %v502_v29  ;;  %v503_v33 = vshrl.u32 %v502_v29, 5 }
 0x104   :  { %v505_v31 = vsub.s32 32, %v504_v30  ;;  %v507_v35 = vshll.u32 %v709_v34, %v504_v30  ;;  %v510_v37 = vshll.u32 %v710_v36, %v504_v30  ;;  %v513_v41 = vshll.u32 %v711_v39, %v504_v30 }
 0x105   :  { %v516_v44 = vshll.u32 %v712_v42, %v504_v30  ;;  %v519_v47 = vshll.u32 %v713_v45, %v504_v30  ;;  %vm522_vm4 = vcmp.lt.s32.totalorder %v503_v33, 1  ;;  %vm525_vm5 = vcmp.lt.s32.totalorder %v503_v33, 4 }
 0x106   :  { %v508_v38 = vshrl.u32 %v710_v36, %v505_v31  ;;  %v511_v40 = vshrl.u32 %v711_v39, %v505_v31  ;;  %v514_v43 = vshrl.u32 %v712_v42, %v505_v31  ;;  %v517_v46 = vshrl.u32 %v713_v45, %v505_v31 }
 0x107   :  { %v520_v49 = vshrl.u32 %v714_v48, %v505_v31  ;;  %v506_v59 = vshrl.u32 %v709_v34, %v505_v31  ;;  %vm524_vm6 = vcmp.lt.s32.totalorder %v503_v33, 3  ;;  %vm523_vm7 = vcmp.lt.s32.totalorder %v503_v33, 2 }
 0x108   :  { %v509_v51 = vor.u32 %v508_v38, %v507_v35  ;;  %v512_v52 = vor.u32 %v511_v40, %v510_v37  ;;  %v515_v53 = vor.u32 %v514_v43, %v513_v41  ;;  %v518_v54 = vor.u32 %v517_v46, %v516_v44 }
 0x109   :  { %v521_v55 = vor.u32 %v520_v49, %v519_v47 }
 0x10a   :  { %v527_v56 = vsel %vm525_vm5, %v515_v53, 2102212464  ;;  %v530_v57 = vsel %vm522_vm4, %v509_v51, %v512_v52  ;;  %v534_v58 = vsel %vm522_vm4, %v512_v52, %v515_v53  ;;  %v531_v60 = vsel %vm525_vm5, %v518_v54, 920167782 }
 0x10b   :  { %v535_v61 = vsel %vm525_vm5, %v521_v55, 1326507024  ;;  %v532_v62 = vsel %vm524_vm6, %v515_v53, %v531_v60  ;;  %v526_v1 = vsel %vm522_vm4, %v506_v59, %v509_v51  ;;  %v528_v2 = vsel %vm524_vm6, %v512_v52, %v527_v56 }
 0x10c   :  { %v536_v63 = vsel %vm524_vm6, %v518_v54, %v535_v61  ;;  %v533_v3 = vsel %vm523_vm7, %v530_v57, %v532_v62  ;;  %v529_v9 = vsel %vm523_vm7, %v526_v1, %v528_v2 }
 0x10d   :  { %v537_v4 = vsel %vm523_vm7, %v534_v58, %v536_v63  ;;  %v768_v7 = vmul.u32.u64.low %v538_v0, %v533_v3  ;;  %v769_v8 = vmul.u32.u64.high %v538_v0, %v533_v3, %v768_v7  ;;  %v545_v11 = vmul.u32 %v538_v0, %v529_v9 }
 0x10e   :  { %v765_v5 = vmul.u32.u64.low %v538_v0, %v537_v4  ;;  %v766_v6 = vmul.u32.u64.high %v538_v0, %v537_v4, %v765_v5 }
 0x10f   :  { %v548_v10 = vadd.s32 1, %v769_v8 }
 0x110   :  { %vm547_vm8 = vc.u32 %v766_v6, %v768_v7  ;;  %v546_v24 = vadd.s32 %v768_v7, %v766_v6 }
 0x111   :  { %v549_v12 = vsel %vm547_vm8, %v548_v10, %v769_v8 }
 0x112   :  { %v550_v13 = vadd.s32 %v549_v12, %v545_v11 }
 0x114   :  { %v551_v14 = vadd.s32 536870912, %v550_v13 }
 0x116   :  { %v552_v15 = vshrl.u32 %v551_v14, 30 }
 0x118   :  { %v553_v16 = vshll.u32 %v552_v15, 30  ;;  %v576_v37 = vsub.s32 4, %v552_v15 }
 0x11a   :  { %v554_v17 = vsub.s32 %v550_v13, %v553_v16  ;;  %v577_v40 = vsel %vm492_vm10, %v576_v37, %v552_v15 }
 0x11b   :  { %v579_v42 = vsel %vm491_vm11, 0, %v577_v40 }
 0x11c   :  { %v556_v18 = vsub.s32 0, %v554_v17  ;;  %v583_v43 = vadd.s32 3, %v579_v42 }
 0x11e   :  { %v612_v19 = vmin.u32 %v556_v18, %v554_v17  ;;  %v584_v44 = vand.u32 3, %v583_v43 }
 0x120   :  { %v558_v20 = vclz %v612_v19  ;;  %vm589_vm12 = vcmp.eq.s32.totalorder %v584_v44, 2  ;;  %vm586_vm13 = vcmp.eq.s32.totalorder %v584_v44, 0  ;;  %vm585_vm14 = vcmp.lt.s32.totalorder %v584_v44, 2 }
 0x122   :  { %v613_v21 = vadd.s32 4294967294, %v558_v20 }
 0x124   :  { %vm614_vm9 = vcmp.lt.s32.totalorder %v613_v21, 0 }
 0x125   :  { %v561_v22 = vsel %vm614_vm9, 0, %v613_v21 }
 0x126   :  { %v562_v25 = vsub.s32 32, %v561_v22  ;;  %v566_v26 = vsub.s32 4294967266, %v561_v22  ;;  %v563_v27 = vshll.u32 %v554_v17, %v561_v22 }
 0x128   :  { %v564_v29 = vshrl.u32 %v546_v24, %v562_v25  ;;  %v567_v30 = vadd.s32 127, %v566_v26 }
 0x12a   :  { %v565_v31 = vor.u32 %v564_v29, %v563_v27  ;;  %v568_v32 = vshll.u32 %v567_v30, 23 }
 0x12c   :  { %v569_v33 = vor.u32 4788187, %v568_v32  ;;  %v572_v35 = vcvt.s32.f32 %v565_v31 }
 0x12e   :  { %v570_v34 = vand.u32 2147483647, %v569_v33 }
 0x130   :  { %v573_v36 = vmul.f32 %v572_v35, %v570_v34 }
 0x132   :  { %v574_v38 = vxor.u32 2147483648, %v573_v36 }
 0x134   :  { %v575_v39 = vsel %vm492_vm10, %v574_v38, %v573_v36 }
 0x135   :  { %v578_v41 = vsel %vm491_vm11, %v759_v23, %v575_v39 }
 0x136   :  { %679 = vcosq.f32 %v578_v41 }
 0x137   :  { %681 = vsinq.f32 %v578_v41 }
 0x140   :  { %v680_v45 = vpop.eup %679 }
 0x141   :  { %v682_v46 = vpop.eup %681  ;;  %v590_v47 = vxor.u32 2147483648, %v680_v45 }
 0x142   :  { %v587_v48 = vxor.u32 2147483648, %v682_v46 }
 0x143   :  { %v591_v49 = vsel %vm589_vm12, %v590_v47, %v682_v46 }
 0x144   :  { %v588_v28 = vsel %vm586_vm13, %v680_v45, %v587_v48 }
 0x145   :  { %v592_v50 = vsel %vm585_vm14, %v588_v28, %v591_v49 }
 0x146   :  { %v593_v51 = vsel %vm582_vm15, nan, %v592_v50 }
 0x147   :  { %594 = vst [vmem:[#allocation2] sm:$0xff] %v593_v51 }
 0x148   :  { %694 = shalt.err (!%p691_p4)
}
 0x149   :  { %s695_s24 = scalar_lea.hbm %s796_s4, 128 }
 0x14a   :  { %p696_p5 = scmp.ne.s32.totalorder %s796_s4, %s695_s24  ;;  %p699_p6 = scmp.lt.u32.totalorder %s695_s24, %s796_s4 }
 0x14c   :  { %p701_p7 = pnand %p699_p6, %p696_p5 }
 0x14e   :  { %704 = shalt.err (!%p701_p7)
}
 0x14f   :  { %604 = dma.vmem_to_hbm [thread:$0]  %s602_s3, 128, %s796_s4, [#allocation3]  }
 0x150   :  { %705 = dma.done.wait [#allocation3], 128  }
 0x151   :  { %706 = vsyncadd [#allocation3], 4294967168 }
 0x152   :  { %608 = vsyncpa [#allocation3], 1 }

</bundles_post_ra>
